<compile_context>
chip_gen: v7x
topology: tpu7x:2x2x1
jax: 0.10.0
libtpu: 0.0.40
codegen_flags: <defaults>
</compile_context>

<pallas_src>
import functools

import jax
import jax.numpy as jnp
from jax import lax
from jax.experimental import pallas as pl
from jax.experimental.pallas import tpu as pltpu


# ----------------------------- plain-JAX glue ------------------------------

def square_distance(src, dst):
    # src [B,N,C], dst [B,M,C] -> [B,N,M]
    dist = -2.0 * jnp.einsum("bnc,bmc->bnm", src, dst)
    dist = dist + jnp.sum(src ** 2, -1)[:, :, None]
    dist = dist + jnp.sum(dst ** 2, -1)[:, None, :]
    return dist


def farthest_point_sample(xyz, npoint):
    # xyz [B,N,3] -> [B,npoint] int32
    B, N, _ = xyz.shape

    def body(i, state):
        centroids, distance, farthest = state
        centroids = centroids.at[:, i].set(farthest)
        centroid = jnp.take_along_axis(xyz, farthest[:, None, None], axis=1)
        dist = jnp.sum((xyz - centroid) ** 2, -1)
        distance = jnp.minimum(distance, dist)
        farthest = jnp.argmax(distance, axis=-1).astype(jnp.int32)
        return centroids, distance, farthest

    centroids = jnp.zeros((B, npoint), jnp.int32)
    distance = jnp.full((B, N), 1e10, jnp.float32)
    # TODO(synk): torch picks a random initial farthest index; fixed to 0 here.
    farthest = jnp.zeros((B,), jnp.int32)
    centroids, _, _ = lax.fori_loop(0, npoint, body,
                                    (centroids, distance, farthest))
    return centroids


def index_points(points, idx):
    # points [B,N,C], idx [B,...] -> [B,...,C]
    B = points.shape[0]
    C = points.shape[-1]
    idx_flat = idx.reshape(B, -1)
    out = jnp.take_along_axis(points, idx_flat[..., None], axis=1)
    return out.reshape(idx.shape + (C,))


def query_ball_point(radius, nsample, xyz, new_xyz):
    # xyz [B,N,3], new_xyz [B,S,3] -> [B,S,nsample] int32
    B, N, _ = xyz.shape
    S = new_xyz.shape[1]
    sqrdists = square_distance(new_xyz, xyz)                       # [B,S,N]
    idx = jnp.broadcast_to(jnp.arange(N, dtype=jnp.float32)[None, None, :],
                           (B, S, N))
    keys = jnp.where(sqrdists > radius ** 2, jnp.float32(N), idx)
    # nsample smallest keys, ascending == torch sort()[:,:,:nsample], but via
    # a partial top_k selection instead of a full sort over N.
    neg_vals = lax.top_k(-keys, nsample)[0]
    group_idx = (-neg_vals).astype(jnp.int32)                      # [B,S,nsample]
    group_first = jnp.broadcast_to(group_idx[:, :, :1], (B, S, nsample))
    group_idx = jnp.where(group_idx == N, group_first, group_idx)
    return group_idx


def gather_channel_major(points_cm, group_idx_t):
    """points_cm [B,C,N], group_idx_t [B,K,S] -> [B,C,K,S] (kernel layout)."""
    B, C, N = points_cm.shape
    _, K, S = group_idx_t.shape
    flat = jnp.take_along_axis(points_cm, group_idx_t.reshape(B, 1, K * S),
                               axis=2)                             # [B,C,K*S]
    return flat.reshape(B, C, K, S)


# ------------------------------ Pallas kernel ------------------------------

def _msg_mlp_kernel(g_ref, *refs, num_layers, kb):
    """One grid step: (Cin, KB, TILE_S) bf16 neighbor slab -> per-neighbor MLP
    (BN scale pre-folded into weights) + shift + ReLU (f32 epilogue), running
    max over neighbors accumulated into the output-resident (Cout, TILE_S)."""
    out_ref = refs[-1]
    params = refs[:-1]                       # [w0, shift0, w1, shift1, ...]

    chunk_max = None
    for j in range(kb):                      # KB <= 8: bounded unroll
        h = g_ref[0, :, j, :]                # (Cin, TILE_S) bf16, lane-dense
        act = None
        for l in range(num_layers):
            w = params[2 * l][...]           # (Cl, Cprev) bf16, scale folded
            s = params[2 * l + 1][...]       # (Cl, 1) f32 (BN shift + bias)
            z = jnp.dot(w, h, preferred_element_type=jnp.float32)  # MXU f32
            act = jnp.maximum(z + s, 0.0)                          # f32 epilogue
            if l < num_layers - 1:
                h = act.astype(jnp.bfloat16)                       # bf16 MXU operand
        chunk_max = act if chunk_max is None else jnp.maximum(chunk_max, act)

    kc = pl.program_id(2)

    @pl.when(kc == 0)
    def _():
        out_ref[0] = chunk_max

    @pl.when(kc > 0)
    def _():
        out_ref[0] = jnp.maximum(out_ref[0], chunk_max)


# ------------------------- tiling / VMEM budgeting -------------------------

def _round_up(x, m):
    return (x + m - 1) // m * m


def _vmem_capacity_bytes():
    try:
        return int(pltpu.get_tpu_info().vmem_capacity_bytes)
    except Exception:
        return 64 * 1024 * 1024              # conservative (v7x per-TC VMEM)


def _block_vmem_bytes(tile_s, cin, kb, couts):
    """Model the real tiled VMEM footprint (lane dim padded to 128, sublane
    to 8) of all double-buffered blocks plus live activations."""
    lane = lambda n: _round_up(max(n, 1), 128)
    sub = lambda n: _round_up(max(n, 1), 8)
    total = 2 * cin * sub(kb) * lane(tile_s) * 2          # grouped block (bf16)
    total += 2 * sub(couts[-1]) * lane(tile_s) * 4        # output block (f32)
    prev = cin
    for c in couts:                                       # weights + shifts
        total += 2 * (sub(c) * lane(prev) * 2 + sub(c) * lane(1) * 4)
        prev = c
    cmax = max([cin] + list(couts))
    total += 4 * sub(cmax) * lane(tile_s) * 4             # live activations
    return total


def _pick_tile_s(S, B, cin, kb, couts, budget):
    """Largest legal S-tile (full S, or a multiple-of-128 divisor of S) that
    fits the budget; keep >= 2 parallel grid steps when possible (megacore)."""
    cands = sorted({S} | {d for d in range(128, S, 128) if S % d == 0},
                   reverse=True)
    fitting = [t for t in cands if _block_vmem_bytes(t, cin, kb, couts) <= budget]
    if not fitting:
        return cands[-1]
    if B * (S // fitting[0]) < 2:
        multi = [t for t in fitting if B * (S // t) >= 2]
        if multi:
            return multi[0]
    return fitting[0]


# --------------------------- MLP + max-pool wrapper -------------------------

def msg_mlp_maxpool(grouped_cm, weights, scales, shifts):
    """grouped_cm [B,Cin,K,S] bf16 -> [B,Cout,S] f32 via Pallas kernel."""
    B, Cin, K, S = grouped_cm.shape
    num_layers = len(weights)
    couts = [w.shape[1] for w in weights]
    Cout = couts[-1]

    # Fold BN scale into the conv weights in f32, transpose to (Cout, Cprev),
    # cast to bf16 for the MXU; shifts stay f32 for the epilogue.
    wt_list, shift_list = [], []
    for w, sc, sh in zip(weights, scales, shifts):
        wt = (w * sc).T                                     # (c_out, c_prev) f32
        wt_list.append(wt.astype(jnp.bfloat16))
        shift_list.append(sh.reshape(-1, 1).astype(jnp.float32))

    KB = 8 if K % 8 == 0 else K                             # legal sublane chunk
    capacity = _vmem_capacity_bytes()
    budget = capacity * 3 // 8                              # ~24 MiB v7x / ~48 MiB v6e
    TILE_S = _pick_tile_s(S, B, Cin, KB, couts, budget)

    kernel = functools.partial(_msg_mlp_kernel, num_layers=num_layers, kb=KB)

    # TODO(synk): single-buffer the constant weight/shift blocks
    # (pipeline_mode=pl.Buffered(1)) and deepen grouped-input buffering once
    # validated on all target generations.
    in_specs = [pl.BlockSpec((1, Cin, KB, TILE_S),
                             lambda b, st, kc: (b, 0, kc, st))]
    flat_params = []
    for wt, sh in zip(wt_list, shift_list):
        in_specs.append(pl.BlockSpec(wt.shape, lambda b, st, kc: (0, 0)))
        in_specs.append(pl.BlockSpec(sh.shape, lambda b, st, kc: (0, 0)))
        flat_params += [wt, sh]

    flops = 2 * B * K * S * sum(p * c for p, c in zip([Cin] + couts[:-1], couts))
    bytes_accessed = (grouped_cm.size * 2 + B * Cout * S * 4
                      + sum(int(w.size) * 2 for w in wt_list))

    out = pl.pallas_call(
        kernel,
        out_shape=jax.ShapeDtypeStruct((B, Cout, S), jnp.float32),
        grid_spec=pltpu.PrefetchScalarGridSpec(
            num_scalar_prefetch=0,
            grid=(B, S // TILE_S, K // KB),          # reduction (K) axis last
            in_specs=in_specs,
            out_specs=pl.BlockSpec((1, Cout, TILE_S),
                                   lambda b, st, kc: (b, 0, st)),
        ),
        compiler_params=pltpu.CompilerParams(
            dimension_semantics=("parallel", "parallel", "arbitrary"),
            vmem_limit_bytes=min(capacity * 3 // 4, 96 * 1024 * 1024)),
        cost_estimate=pl.CostEstimate(flops=flops, transcendentals=0,
                                      bytes_accessed=bytes_accessed),
    )(grouped_cm, *flat_params)
    return out


# --------------------------- module forward pass ---------------------------

def pointnet_sa_msg_forward(xyz, points, params, npoint, radius_list,
                            nsample_list):
    """xyz [B,3,N], points [B,D,N] (PyTorch layout) ->
       new_xyz [B,3,S], new_points_concat [B, sum(mlp[-1]), S]."""
    xyz_t = jnp.transpose(xyz, (0, 2, 1))                     # [B,N,3] (small)
    S = npoint

    fps_idx = farthest_point_sample(xyz_t, S)                 # [B,S]
    new_xyz_t = index_points(xyz_t, fps_idx)                  # [B,S,3]
    new_xyz_cm = jnp.transpose(new_xyz_t, (0, 2, 1))          # [B,3,S] (small)

    new_points_list = []
    for i, radius in enumerate(radius_list):
        K = nsample_list[i]
        group_idx = query_ball_point(radius, K, xyz_t, new_xyz_t)   # [B,S,K]
        idx_t = jnp.transpose(group_idx, (0, 2, 1))                  # [B,K,S] (small)

        # Channel-major gathers produce the kernel layout [B,C,K,S] directly
        # (no transpose / pad of the big grouped tensor).
        grouped_xyz = gather_channel_major(xyz, idx_t)               # [B,3,K,S]
        grouped_xyz = grouped_xyz - new_xyz_cm[:, :, None, :]        # f32 sub
        if points is not None:
            grouped_pts = gather_channel_major(points, idx_t)        # [B,D,K,S]
            grouped = jnp.concatenate([grouped_pts.astype(jnp.bfloat16),
                                       grouped_xyz.astype(jnp.bfloat16)],
                                      axis=1)                        # [B,D+3,K,S]
        else:
            grouped = grouped_xyz.astype(jnp.bfloat16)

        weights, scales, shifts = params[i]
        new_points = msg_mlp_maxpool(grouped, weights, scales, shifts)  # [B,Cout,S]
        new_points_list.append(new_points)

    new_points_concat = jnp.concatenate(new_points_list, axis=1)
    return new_xyz_cm, new_points_concat


# ---------------------------------- main -----------------------------------

if __name__ == "__main__":
    # Module config (small, consistent with PointNetSetAbstractionMsg.__init__)
    B, N, D = 2, 256, 4
    npoint = 128
    radius_list = [0.5, 1.0]
    nsample_list = [8, 16]
    mlp_list = [[16, 32], [16, 32, 64]]
    in_channel = D

    key = jax.random.PRNGKey(0)
    k_xyz, k_pts, pk = jax.random.split(key, 3)
    xyz = jax.random.normal(k_xyz, (B, 3, N), dtype=jnp.float32)
    points = jax.random.normal(k_pts, (B, D, N), dtype=jnp.float32)

    # Deterministic synthetic parameters: Conv2d(1x1) weight/bias + BatchNorm2d
    # (gamma, beta, running stats).  BN is applied in eval mode and folded with
    # the conv bias into a per-channel (scale, shift); scale is later folded
    # into the weights (in f32) inside msg_mlp_maxpool.
    # TODO(synk): training-mode BN (batch statistics) would need a cross-batch
    # reduction pass; eval-mode running stats are used here.
    eps = 1e-5
    params = []
    for mlps in mlp_list:
        last = in_channel + 3
        ws, scs, shs = [], [], []
        for c_out in mlps:
            pk, kw, kb, kg, kbe, km, kv = jax.random.split(pk, 7)
            w = 0.1 * jax.random.normal(kw, (last, c_out), jnp.float32)
            bias = 0.1 * jax.random.normal(kb, (c_out,), jnp.float32)
            gamma = 1.0 + 0.1 * jax.random.normal(kg, (c_out,), jnp.float32)
            beta = 0.1 * jax.random.normal(kbe, (c_out,), jnp.float32)
            r_mean = 0.1 * jax.random.normal(km, (c_out,), jnp.float32)
            r_var = 1.0 + 0.1 * jax.random.uniform(kv, (c_out,), jnp.float32)
            inv_std = jax.lax.rsqrt(r_var + eps)
            scale = (gamma * inv_std).reshape(1, c_out)
            shift = (beta + (bias - r_mean) * gamma * inv_std).reshape(1, c_out)
            ws.append(w); scs.append(scale); shs.append(shift)
            last = c_out
        params.append((ws, scs, shs))

    new_xyz, new_points = pointnet_sa_msg_forward(
        xyz, points, params, npoint, radius_list, nsample_list)
    jax.block_until_ready((new_xyz, new_points))

    assert new_xyz.shape == (B, 3, npoint)
    assert new_points.shape == (B, sum(m[-1] for m in mlp_list), npoint)
    assert bool(jnp.all(jnp.isfinite(new_points)))
    print("KERNEL_OK")
</pallas_src>

<mosaic_0001>
module attributes {stable_mosaic.version = 11 : i64} {
  func.func @_msg_mlp_kernel(%arg0: i32, %arg1: i32, %arg2: i32, %arg3: memref<1x7x8x128xbf16, #tpu.memory_space<vmem>>, %arg4: memref<16x7xbf16, #tpu.memory_space<vmem>>, %arg5: memref<16x1xf32, #tpu.memory_space<vmem>>, %arg6: memref<32x16xbf16, #tpu.memory_space<vmem>>, %arg7: memref<32x1xf32, #tpu.memory_space<vmem>>, %arg8: memref<1x32x128xf32, #tpu.memory_space<vmem>>) attributes {dimension_semantics = [#tpu.dimension_semantics<parallel>, #tpu.dimension_semantics<parallel>, #tpu.dimension_semantics<arbitrary>], iteration_bounds = array<i64: 2, 1, 1>, scalar_prefetch = 0 : i64, scratch_operands = 0 : i64, tpu.core_type = #tpu.core_type<tc>, window_params = [{transform_indices = @transform_0, window_bounds = array<i64: 1, 7, 8, 128>}, {pipeline_mode = #tpu.pipeline_mode<synchronous>, transform_indices = @transform_1, window_bounds = array<i64: 16, 7>}, {pipeline_mode = #tpu.pipeline_mode<synchronous>, transform_indices = @transform_2, window_bounds = array<i64: 16, 1>}, {pipeline_mode = #tpu.pipeline_mode<synchronous>, transform_indices = @transform_3, window_bounds = array<i64: 32, 16>}, {pipeline_mode = #tpu.pipeline_mode<synchronous>, transform_indices = @transform_4, window_bounds = array<i64: 32, 1>}, {transform_indices = @transform_5, window_bounds = array<i64: 1, 32, 128>}]} {
    %c0 = arith.constant 0 : index
    %c0_0 = arith.constant 0 : index
    %c0_1 = arith.constant 0 : index
    %c0_2 = arith.constant 0 : index
    %0 = vector.load %arg3[%c0, %c0_0, %c0_1, %c0_2] : memref<1x7x8x128xbf16, #tpu.memory_space<vmem>>, vector<1x7x1x128xbf16>
    %1 = vector.shape_cast %0 : vector<1x7x1x128xbf16> to vector<7x128xbf16>
    %c0_3 = arith.constant 0 : index
    %c0_4 = arith.constant 0 : index
    %2 = vector.load %arg4[%c0_3, %c0_4] : memref<16x7xbf16, #tpu.memory_space<vmem>>, vector<16x7xbf16>
    %c0_5 = arith.constant 0 : index
    %c0_6 = arith.constant 0 : index
    %3 = vector.load %arg5[%c0_5, %c0_6] : memref<16x1xf32, #tpu.memory_space<vmem>>, vector<16x1xf32>
    %cst = arith.constant dense<0.000000e+00> : vector<16x128xf32>
    %4 = tpu.matmul %2, %1, %cst {dimension_numbers = #tpu.dot_dimension_numbers<[1], [0], [0], [1], [0, 0, 1, 1], [], []>} : vector<16x7xbf16>, vector<7x128xbf16>, vector<16x128xf32> -> vector<16x128xf32>
    %5 = vector.broadcast %3 : vector<16x1xf32> to vector<16x128xf32>
    %6 = arith.addf %4, %5 : vector<16x128xf32>
    %cst_7 = arith.constant 0.000000e+00 : f32
    %7 = vector.broadcast %cst_7 : f32 to vector<16x128xf32>
    %8 = arith.maximumf %6, %7 : vector<16x128xf32>
    %9 = arith.truncf %8 : vector<16x128xf32> to vector<16x128xbf16>
    %c0_8 = arith.constant 0 : index
    %c0_9 = arith.constant 0 : index
    %10 = vector.load %arg6[%c0_8, %c0_9] : memref<32x16xbf16, #tpu.memory_space<vmem>>, vector<32x16xbf16>
    %c0_10 = arith.constant 0 : index
    %c0_11 = arith.constant 0 : index
    %11 = vector.load %arg7[%c0_10, %c0_11] : memref<32x1xf32, #tpu.memory_space<vmem>>, vector<32x1xf32>
    %cst_12 = arith.constant dense<0.000000e+00> : vector<32x128xf32>
    %12 = tpu.matmul %10, %9, %cst_12 {dimension_numbers = #tpu.dot_dimension_numbers<[1], [0], [0], [1], [0, 0, 1, 1], [], []>} : vector<32x16xbf16>, vector<16x128xbf16>, vector<32x128xf32> -> vector<32x128xf32>
    %13 = vector.broadcast %11 : vector<32x1xf32> to vector<32x128xf32>
    %14 = arith.addf %12, %13 : vector<32x128xf32>
    %cst_13 = arith.constant 0.000000e+00 : f32
    %15 = vector.broadcast %cst_13 : f32 to vector<32x128xf32>
    %16 = arith.maximumf %14, %15 : vector<32x128xf32>
    %c0_14 = arith.constant 0 : index
    %c0_15 = arith.constant 0 : index
    %c1 = arith.constant 1 : index
    %c0_16 = arith.constant 0 : index
    %17 = vector.load %arg3[%c0_14, %c0_15, %c1, %c0_16] : memref<1x7x8x128xbf16, #tpu.memory_space<vmem>>, vector<1x7x1x128xbf16>
    %18 = vector.shape_cast %17 : vector<1x7x1x128xbf16> to vector<7x128xbf16>
    %c0_17 = arith.constant 0 : index
    %c0_18 = arith.constant 0 : index
    %19 = vector.load %arg4[%c0_17, %c0_18] : memref<16x7xbf16, #tpu.memory_space<vmem>>, vector<16x7xbf16>
    %c0_19 = arith.constant 0 : index
    %c0_20 = arith.constant 0 : index
    %20 = vector.load %arg5[%c0_19, %c0_20] : memref<16x1xf32, #tpu.memory_space<vmem>>, vector<16x1xf32>
    %cst_21 = arith.constant dense<0.000000e+00> : vector<16x128xf32>
    %21 = tpu.matmul %19, %18, %cst_21 {dimension_numbers = #tpu.dot_dimension_numbers<[1], [0], [0], [1], [0, 0, 1, 1], [], []>} : vector<16x7xbf16>, vector<7x128xbf16>, vector<16x128xf32> -> vector<16x128xf32>
    %22 = vector.broadcast %20 : vector<16x1xf32> to vector<16x128xf32>
    %23 = arith.addf %21, %22 : vector<16x128xf32>
    %cst_22 = arith.constant 0.000000e+00 : f32
    %24 = vector.broadcast %cst_22 : f32 to vector<16x128xf32>
    %25 = arith.maximumf %23, %24 : vector<16x128xf32>
    %26 = arith.truncf %25 : vector<16x128xf32> to vector<16x128xbf16>
    %c0_23 = arith.constant 0 : index
    %c0_24 = arith.constant 0 : index
    %27 = vector.load %arg6[%c0_23, %c0_24] : memref<32x16xbf16, #tpu.memory_space<vmem>>, vector<32x16xbf16>
    %c0_25 = arith.constant 0 : index
    %c0_26 = arith.constant 0 : index
    %28 = vector.load %arg7[%c0_25, %c0_26] : memref<32x1xf32, #tpu.memory_space<vmem>>, vector<32x1xf32>
    %cst_27 = arith.constant dense<0.000000e+00> : vector<32x128xf32>
    %29 = tpu.matmul %27, %26, %cst_27 {dimension_numbers = #tpu.dot_dimension_numbers<[1], [0], [0], [1], [0, 0, 1, 1], [], []>} : vector<32x16xbf16>, vector<16x128xbf16>, vector<32x128xf32> -> vector<32x128xf32>
    %30 = vector.broadcast %28 : vector<32x1xf32> to vector<32x128xf32>
    %31 = arith.addf %29, %30 : vector<32x128xf32>
    %cst_28 = arith.constant 0.000000e+00 : f32
    %32 = vector.broadcast %cst_28 : f32 to vector<32x128xf32>
    %33 = arith.maximumf %31, %32 : vector<32x128xf32>
    %34 = arith.maximumf %16, %33 : vector<32x128xf32>
    %c0_29 = arith.constant 0 : index
    %c0_30 = arith.constant 0 : index
    %c2 = arith.constant 2 : index
    %c0_31 = arith.constant 0 : index
    %35 = vector.load %arg3[%c0_29, %c0_30, %c2, %c0_31] : memref<1x7x8x128xbf16, #tpu.memory_space<vmem>>, vector<1x7x1x128xbf16>
    %36 = vector.shape_cast %35 : vector<1x7x1x128xbf16> to vector<7x128xbf16>
    %c0_32 = arith.constant 0 : index
    %c0_33 = arith.constant 0 : index
    %37 = vector.load %arg4[%c0_32, %c0_33] : memref<16x7xbf16, #tpu.memory_space<vmem>>, vector<16x7xbf16>
    %c0_34 = arith.constant 0 : index
    %c0_35 = arith.constant 0 : index
    %38 = vector.load %arg5[%c0_34, %c0_35] : memref<16x1xf32, #tpu.memory_space<vmem>>, vector<16x1xf32>
    %cst_36 = arith.constant dense<0.000000e+00> : vector<16x128xf32>
    %39 = tpu.matmul %37, %36, %cst_36 {dimension_numbers = #tpu.dot_dimension_numbers<[1], [0], [0], [1], [0, 0, 1, 1], [], []>} : vector<16x7xbf16>, vector<7x128xbf16>, vector<16x128xf32> -> vector<16x128xf32>
    %40 = vector.broadcast %38 : vector<16x1xf32> to vector<16x128xf32>
    %41 = arith.addf %39, %40 : vector<16x128xf32>
    %cst_37 = arith.constant 0.000000e+00 : f32
    %42 = vector.broadcast %cst_37 : f32 to vector<16x128xf32>
    %43 = arith.maximumf %41, %42 : vector<16x128xf32>
    %44 = arith.truncf %43 : vector<16x128xf32> to vector<16x128xbf16>
    %c0_38 = arith.constant 0 : index
    %c0_39 = arith.constant 0 : index
    %45 = vector.load %arg6[%c0_38, %c0_39] : memref<32x16xbf16, #tpu.memory_space<vmem>>, vector<32x16xbf16>
    %c0_40 = arith.constant 0 : index
    %c0_41 = arith.constant 0 : index
    %46 = vector.load %arg7[%c0_40, %c0_41] : memref<32x1xf32, #tpu.memory_space<vmem>>, vector<32x1xf32>
    %cst_42 = arith.constant dense<0.000000e+00> : vector<32x128xf32>
    %47 = tpu.matmul %45, %44, %cst_42 {dimension_numbers = #tpu.dot_dimension_numbers<[1], [0], [0], [1], [0, 0, 1, 1], [], []>} : vector<32x16xbf16>, vector<16x128xbf16>, vector<32x128xf32> -> vector<32x128xf32>
    %48 = vector.broadcast %46 : vector<32x1xf32> to vector<32x128xf32>
    %49 = arith.addf %47, %48 : vector<32x128xf32>
    %cst_43 = arith.constant 0.000000e+00 : f32
    %50 = vector.broadcast %cst_43 : f32 to vector<32x128xf32>
    %51 = arith.maximumf %49, %50 : vector<32x128xf32>
    %52 = arith.maximumf %34, %51 : vector<32x128xf32>
    %c0_44 = arith.constant 0 : index
    %c0_45 = arith.constant 0 : index
    %c3 = arith.constant 3 : index
    %c0_46 = arith.constant 0 : index
    %53 = vector.load %arg3[%c0_44, %c0_45, %c3, %c0_46] : memref<1x7x8x128xbf16, #tpu.memory_space<vmem>>, vector<1x7x1x128xbf16>
    %54 = vector.shape_cast %53 : vector<1x7x1x128xbf16> to vector<7x128xbf16>
    %c0_47 = arith.constant 0 : index
    %c0_48 = arith.constant 0 : index
    %55 = vector.load %arg4[%c0_47, %c0_48] : memref<16x7xbf16, #tpu.memory_space<vmem>>, vector<16x7xbf16>
    %c0_49 = arith.constant 0 : index
    %c0_50 = arith.constant 0 : index
    %56 = vector.load %arg5[%c0_49, %c0_50] : memref<16x1xf32, #tpu.memory_space<vmem>>, vector<16x1xf32>
    %cst_51 = arith.constant dense<0.000000e+00> : vector<16x128xf32>
    %57 = tpu.matmul %55, %54, %cst_51 {dimension_numbers = #tpu.dot_dimension_numbers<[1], [0], [0], [1], [0, 0, 1, 1], [], []>} : vector<16x7xbf16>, vector<7x128xbf16>, vector<16x128xf32> -> vector<16x128xf32>
    %58 = vector.broadcast %56 : vector<16x1xf32> to vector<16x128xf32>
    %59 = arith.addf %57, %58 : vector<16x128xf32>
    %cst_52 = arith.constant 0.000000e+00 : f32
    %60 = vector.broadcast %cst_52 : f32 to vector<16x128xf32>
    %61 = arith.maximumf %59, %60 : vector<16x128xf32>
    %62 = arith.truncf %61 : vector<16x128xf32> to vector<16x128xbf16>
    %c0_53 = arith.constant 0 : index
    %c0_54 = arith.constant 0 : index
    %63 = vector.load %arg6[%c0_53, %c0_54] : memref<32x16xbf16, #tpu.memory_space<vmem>>, vector<32x16xbf16>
    %c0_55 = arith.constant 0 : index
    %c0_56 = arith.constant 0 : index
    %64 = vector.load %arg7[%c0_55, %c0_56] : memref<32x1xf32, #tpu.memory_space<vmem>>, vector<32x1xf32>
    %cst_57 = arith.constant dense<0.000000e+00> : vector<32x128xf32>
    %65 = tpu.matmul %63, %62, %cst_57 {dimension_numbers = #tpu.dot_dimension_numbers<[1], [0], [0], [1], [0, 0, 1, 1], [], []>} : vector<32x16xbf16>, vector<16x128xbf16>, vector<32x128xf32> -> vector<32x128xf32>
    %66 = vector.broadcast %64 : vector<32x1xf32> to vector<32x128xf32>
    %67 = arith.addf %65, %66 : vector<32x128xf32>
    %cst_58 = arith.constant 0.000000e+00 : f32
    %68 = vector.broadcast %cst_58 : f32 to vector<32x128xf32>
    %69 = arith.maximumf %67, %68 : vector<32x128xf32>
    %70 = arith.maximumf %52, %69 : vector<32x128xf32>
    %c0_59 = arith.constant 0 : index
    %c0_60 = arith.constant 0 : index
    %c4 = arith.constant 4 : index
    %c0_61 = arith.constant 0 : index
    %71 = vector.load %arg3[%c0_59, %c0_60, %c4, %c0_61] : memref<1x7x8x128xbf16, #tpu.memory_space<vmem>>, vector<1x7x1x128xbf16>
    %72 = vector.shape_cast %71 : vector<1x7x1x128xbf16> to vector<7x128xbf16>
    %c0_62 = arith.constant 0 : index
    %c0_63 = arith.constant 0 : index
    %73 = vector.load %arg4[%c0_62, %c0_63] : memref<16x7xbf16, #tpu.memory_space<vmem>>, vector<16x7xbf16>
    %c0_64 = arith.constant 0 : index
    %c0_65 = arith.constant 0 : index
    %74 = vector.load %arg5[%c0_64, %c0_65] : memref<16x1xf32, #tpu.memory_space<vmem>>, vector<16x1xf32>
    %cst_66 = arith.constant dense<0.000000e+00> : vector<16x128xf32>
    %75 = tpu.matmul %73, %72, %cst_66 {dimension_numbers = #tpu.dot_dimension_numbers<[1], [0], [0], [1], [0, 0, 1, 1], [], []>} : vector<16x7xbf16>, vector<7x128xbf16>, vector<16x128xf32> -> vector<16x128xf32>
    %76 = vector.broadcast %74 : vector<16x1xf32> to vector<16x128xf32>
    %77 = arith.addf %75, %76 : vector<16x128xf32>
    %cst_67 = arith.constant 0.000000e+00 : f32
    %78 = vector.broadcast %cst_67 : f32 to vector<16x128xf32>
    %79 = arith.maximumf %77, %78 : vector<16x128xf32>
    %80 = arith.truncf %79 : vector<16x128xf32> to vector<16x128xbf16>
    %c0_68 = arith.constant 0 : index
    %c0_69 = arith.constant 0 : index
    %81 = vector.load %arg6[%c0_68, %c0_69] : memref<32x16xbf16, #tpu.memory_space<vmem>>, vector<32x16xbf16>
    %c0_70 = arith.constant 0 : index
    %c0_71 = arith.constant 0 : index
    %82 = vector.load %arg7[%c0_70, %c0_71] : memref<32x1xf32, #tpu.memory_space<vmem>>, vector<32x1xf32>
    %cst_72 = arith.constant dense<0.000000e+00> : vector<32x128xf32>
    %83 = tpu.matmul %81, %80, %cst_72 {dimension_numbers = #tpu.dot_dimension_numbers<[1], [0], [0], [1], [0, 0, 1, 1], [], []>} : vector<32x16xbf16>, vector<16x128xbf16>, vector<32x128xf32> -> vector<32x128xf32>
    %84 = vector.broadcast %82 : vector<32x1xf32> to vector<32x128xf32>
    %85 = arith.addf %83, %84 : vector<32x128xf32>
    %cst_73 = arith.constant 0.000000e+00 : f32
    %86 = vector.broadcast %cst_73 : f32 to vector<32x128xf32>
    %87 = arith.maximumf %85, %86 : vector<32x128xf32>
    %88 = arith.maximumf %70, %87 : vector<32x128xf32>
    %c0_74 = arith.constant 0 : index
    %c0_75 = arith.constant 0 : index
    %c5 = arith.constant 5 : index
    %c0_76 = arith.constant 0 : index
    %89 = vector.load %arg3[%c0_74, %c0_75, %c5, %c0_76] : memref<1x7x8x128xbf16, #tpu.memory_space<vmem>>, vector<1x7x1x128xbf16>
    %90 = vector.shape_cast %89 : vector<1x7x1x128xbf16> to vector<7x128xbf16>
    %c0_77 = arith.constant 0 : index
    %c0_78 = arith.constant 0 : index
    %91 = vector.load %arg4[%c0_77, %c0_78] : memref<16x7xbf16, #tpu.memory_space<vmem>>, vector<16x7xbf16>
    %c0_79 = arith.constant 0 : index
    %c0_80 = arith.constant 0 : index
    %92 = vector.load %arg5[%c0_79, %c0_80] : memref<16x1xf32, #tpu.memory_space<vmem>>, vector<16x1xf32>
    %cst_81 = arith.constant dense<0.000000e+00> : vector<16x128xf32>
    %93 = tpu.matmul %91, %90, %cst_81 {dimension_numbers = #tpu.dot_dimension_numbers<[1], [0], [0], [1], [0, 0, 1, 1], [], []>} : vector<16x7xbf16>, vector<7x128xbf16>, vector<16x128xf32> -> vector<16x128xf32>
    %94 = vector.broadcast %92 : vector<16x1xf32> to vector<16x128xf32>
    %95 = arith.addf %93, %94 : vector<16x128xf32>
    %cst_82 = arith.constant 0.000000e+00 : f32
    %96 = vector.broadcast %cst_82 : f32 to vector<16x128xf32>
    %97 = arith.maximumf %95, %96 : vector<16x128xf32>
    %98 = arith.truncf %97 : vector<16x128xf32> to vector<16x128xbf16>
    %c0_83 = arith.constant 0 : index
    %c0_84 = arith.constant 0 : index
    %99 = vector.load %arg6[%c0_83, %c0_84] : memref<32x16xbf16, #tpu.memory_space<vmem>>, vector<32x16xbf16>
    %c0_85 = arith.constant 0 : index
    %c0_86 = arith.constant 0 : index
    %100 = vector.load %arg7[%c0_85, %c0_86] : memref<32x1xf32, #tpu.memory_space<vmem>>, vector<32x1xf32>
    %cst_87 = arith.constant dense<0.000000e+00> : vector<32x128xf32>
    %101 = tpu.matmul %99, %98, %cst_87 {dimension_numbers = #tpu.dot_dimension_numbers<[1], [0], [0], [1], [0, 0, 1, 1], [], []>} : vector<32x16xbf16>, vector<16x128xbf16>, vector<32x128xf32> -> vector<32x128xf32>
    %102 = vector.broadcast %100 : vector<32x1xf32> to vector<32x128xf32>
    %103 = arith.addf %101, %102 : vector<32x128xf32>
    %cst_88 = arith.constant 0.000000e+00 : f32
    %104 = vector.broadcast %cst_88 : f32 to vector<32x128xf32>
    %105 = arith.maximumf %103, %104 : vector<32x128xf32>
    %106 = arith.maximumf %88, %105 : vector<32x128xf32>
    %c0_89 = arith.constant 0 : index
    %c0_90 = arith.constant 0 : index
    %c6 = arith.constant 6 : index
    %c0_91 = arith.constant 0 : index
    %107 = vector.load %arg3[%c0_89, %c0_90, %c6, %c0_91] : memref<1x7x8x128xbf16, #tpu.memory_space<vmem>>, vector<1x7x1x128xbf16>
    %108 = vector.shape_cast %107 : vector<1x7x1x128xbf16> to vector<7x128xbf16>
    %c0_92 = arith.constant 0 : index
    %c0_93 = arith.constant 0 : index
    %109 = vector.load %arg4[%c0_92, %c0_93] : memref<16x7xbf16, #tpu.memory_space<vmem>>, vector<16x7xbf16>
    %c0_94 = arith.constant 0 : index
    %c0_95 = arith.constant 0 : index
    %110 = vector.load %arg5[%c0_94, %c0_95] : memref<16x1xf32, #tpu.memory_space<vmem>>, vector<16x1xf32>
    %cst_96 = arith.constant dense<0.000000e+00> : vector<16x128xf32>
    %111 = tpu.matmul %109, %108, %cst_96 {dimension_numbers = #tpu.dot_dimension_numbers<[1], [0], [0], [1], [0, 0, 1, 1], [], []>} : vector<16x7xbf16>, vector<7x128xbf16>, vector<16x128xf32> -> vector<16x128xf32>
    %112 = vector.broadcast %110 : vector<16x1xf32> to vector<16x128xf32>
    %113 = arith.addf %111, %112 : vector<16x128xf32>
    %cst_97 = arith.constant 0.000000e+00 : f32
    %114 = vector.broadcast %cst_97 : f32 to vector<16x128xf32>
    %115 = arith.maximumf %113, %114 : vector<16x128xf32>
    %116 = arith.truncf %115 : vector<16x128xf32> to vector<16x128xbf16>
    %c0_98 = arith.constant 0 : index
    %c0_99 = arith.constant 0 : index
    %117 = vector.load %arg6[%c0_98, %c0_99] : memref<32x16xbf16, #tpu.memory_space<vmem>>, vector<32x16xbf16>
    %c0_100 = arith.constant 0 : index
    %c0_101 = arith.constant 0 : index
    %118 = vector.load %arg7[%c0_100, %c0_101] : memref<32x1xf32, #tpu.memory_space<vmem>>, vector<32x1xf32>
    %cst_102 = arith.constant dense<0.000000e+00> : vector<32x128xf32>
    %119 = tpu.matmul %117, %116, %cst_102 {dimension_numbers = #tpu.dot_dimension_numbers<[1], [0], [0], [1], [0, 0, 1, 1], [], []>} : vector<32x16xbf16>, vector<16x128xbf16>, vector<32x128xf32> -> vector<32x128xf32>
    %120 = vector.broadcast %118 : vector<32x1xf32> to vector<32x128xf32>
    %121 = arith.addf %119, %120 : vector<32x128xf32>
    %cst_103 = arith.constant 0.000000e+00 : f32
    %122 = vector.broadcast %cst_103 : f32 to vector<32x128xf32>
    %123 = arith.maximumf %121, %122 : vector<32x128xf32>
    %124 = arith.maximumf %106, %123 : vector<32x128xf32>
    %c0_104 = arith.constant 0 : index
    %c0_105 = arith.constant 0 : index
    %c7 = arith.constant 7 : index
    %c0_106 = arith.constant 0 : index
    %125 = vector.load %arg3[%c0_104, %c0_105, %c7, %c0_106] : memref<1x7x8x128xbf16, #tpu.memory_space<vmem>>, vector<1x7x1x128xbf16>
    %126 = vector.shape_cast %125 : vector<1x7x1x128xbf16> to vector<7x128xbf16>
    %c0_107 = arith.constant 0 : index
    %c0_108 = arith.constant 0 : index
    %127 = vector.load %arg4[%c0_107, %c0_108] : memref<16x7xbf16, #tpu.memory_space<vmem>>, vector<16x7xbf16>
    %c0_109 = arith.constant 0 : index
    %c0_110 = arith.constant 0 : index
    %128 = vector.load %arg5[%c0_109, %c0_110] : memref<16x1xf32, #tpu.memory_space<vmem>>, vector<16x1xf32>
    %cst_111 = arith.constant dense<0.000000e+00> : vector<16x128xf32>
    %129 = tpu.matmul %127, %126, %cst_111 {dimension_numbers = #tpu.dot_dimension_numbers<[1], [0], [0], [1], [0, 0, 1, 1], [], []>} : vector<16x7xbf16>, vector<7x128xbf16>, vector<16x128xf32> -> vector<16x128xf32>
    %130 = vector.broadcast %128 : vector<16x1xf32> to vector<16x128xf32>
    %131 = arith.addf %129, %130 : vector<16x128xf32>
    %cst_112 = arith.constant 0.000000e+00 : f32
    %132 = vector.broadcast %cst_112 : f32 to vector<16x128xf32>
    %133 = arith.maximumf %131, %132 : vector<16x128xf32>
    %134 = arith.truncf %133 : vector<16x128xf32> to vector<16x128xbf16>
    %c0_113 = arith.constant 0 : index
    %c0_114 = arith.constant 0 : index
    %135 = vector.load %arg6[%c0_113, %c0_114] : memref<32x16xbf16, #tpu.memory_space<vmem>>, vector<32x16xbf16>
    %c0_115 = arith.constant 0 : index
    %c0_116 = arith.constant 0 : index
    %136 = vector.load %arg7[%c0_115, %c0_116] : memref<32x1xf32, #tpu.memory_space<vmem>>, vector<32x1xf32>
    %cst_117 = arith.constant dense<0.000000e+00> : vector<32x128xf32>
    %137 = tpu.matmul %135, %134, %cst_117 {dimension_numbers = #tpu.dot_dimension_numbers<[1], [0], [0], [1], [0, 0, 1, 1], [], []>} : vector<32x16xbf16>, vector<16x128xbf16>, vector<32x128xf32> -> vector<32x128xf32>
    %138 = vector.broadcast %136 : vector<32x1xf32> to vector<32x128xf32>
    %139 = arith.addf %137, %138 : vector<32x128xf32>
    %cst_118 = arith.constant 0.000000e+00 : f32
    %140 = vector.broadcast %cst_118 : f32 to vector<32x128xf32>
    %141 = arith.maximumf %139, %140 : vector<32x128xf32>
    %142 = arith.maximumf %124, %141 : vector<32x128xf32>
    %c0_i32 = arith.constant 0 : i32
    %143 = arith.cmpi eq, %arg2, %c0_i32 : i32
    %144 = arith.extui %143 : i1 to i32
    %c0_i32_119 = arith.constant 0 : i32
    %145 = arith.cmpi ne, %144, %c0_i32_119 : i32
    scf.if %145 {
      %c0_122 = arith.constant 0 : index
      %c0_123 = arith.constant 0 : index
      %c0_124 = arith.constant 0 : index
      %149 = vector.load %arg8[%c0_122, %c0_123, %c0_124] : memref<1x32x128xf32, #tpu.memory_space<vmem>>, vector<1x32x128xf32>
      %150 = vector.shape_cast %149 : vector<1x32x128xf32> to vector<32x128xf32>
      %151 = vector.shape_cast %142 : vector<32x128xf32> to vector<1x32x128xf32>
      tpu.vector_store %arg8[%c0_122, %c0_123, %c0_124], %151 {strides = array<i32>} : memref<1x32x128xf32, #tpu.memory_space<vmem>>, vector<1x32x128xf32>,
    } else {
    }
    %c0_i32_120 = arith.constant 0 : i32
    %146 = arith.cmpi sgt, %arg2, %c0_i32_120 : i32
    %147 = arith.extui %146 : i1 to i32
    %c0_i32_121 = arith.constant 0 : i32
    %148 = arith.cmpi ne, %147, %c0_i32_121 : i32
    scf.if %148 {
      %c0_122 = arith.constant 0 : index
      %c0_123 = arith.constant 0 : index
      %c0_124 = arith.constant 0 : index
      %149 = vector.load %arg8[%c0_122, %c0_123, %c0_124] : memref<1x32x128xf32, #tpu.memory_space<vmem>>, vector<1x32x128xf32>
      %150 = vector.shape_cast %149 : vector<1x32x128xf32> to vector<32x128xf32>
      %151 = arith.maximumf %150, %142 : vector<32x128xf32>
      %c0_125 = arith.constant 0 : index
      %c0_126 = arith.constant 0 : index
      %c0_127 = arith.constant 0 : index
      %152 = vector.load %arg8[%c0_125, %c0_126, %c0_127] : memref<1x32x128xf32, #tpu.memory_space<vmem>>, vector<1x32x128xf32>
      %153 = vector.shape_cast %152 : vector<1x32x128xf32> to vector<32x128xf32>
      %154 = vector.shape_cast %151 : vector<32x128xf32> to vector<1x32x128xf32>
      tpu.vector_store %arg8[%c0_125, %c0_126, %c0_127], %154 {strides = array<i32>} : memref<1x32x128xf32, #tpu.memory_space<vmem>>, vector<1x32x128xf32>,
    } else {
    }
    return
  }
  func.func @transform_0(%arg0: i32, %arg1: i32, %arg2: i32) -> (i32, i32, i32, i32) {
    %c0_i32 = arith.constant 0 : i32
    %c0_i32_0 = arith.constant 0 : i32
    return %arg0, %c0_i32, %arg2, %arg1 : i32, i32, i32, i32
  }
  func.func @transform_1(%arg0: i32, %arg1: i32, %arg2: i32) -> (i32, i32) {
    %c0_i32 = arith.constant 0 : i32
    %c0_i32_0 = arith.constant 0 : i32
    %c0_i32_1 = arith.constant 0 : i32
    return %c0_i32, %c0_i32_0 : i32, i32
  }
  func.func @transform_2(%arg0: i32, %arg1: i32, %arg2: i32) -> (i32, i32) {
    %c0_i32 = arith.constant 0 : i32
    %c0_i32_0 = arith.constant 0 : i32
    %c0_i32_1 = arith.constant 0 : i32
    return %c0_i32, %c0_i32_0 : i32, i32
  }
  func.func @transform_3(%arg0: i32, %arg1: i32, %arg2: i32) -> (i32, i32) {
    %c0_i32 = arith.constant 0 : i32
    %c0_i32_0 = arith.constant 0 : i32
    %c0_i32_1 = arith.constant 0 : i32
    return %c0_i32, %c0_i32_0 : i32, i32
  }
  func.func @transform_4(%arg0: i32, %arg1: i32, %arg2: i32) -> (i32, i32) {
    %c0_i32 = arith.constant 0 : i32
    %c0_i32_0 = arith.constant 0 : i32
    %c0_i32_1 = arith.constant 0 : i32
    return %c0_i32, %c0_i32_0 : i32, i32
  }
  func.func @transform_5(%arg0: i32, %arg1: i32, %arg2: i32) -> (i32, i32, i32) {
    %c0_i32 = arith.constant 0 : i32
    %c0_i32_0 = arith.constant 0 : i32
    return %arg0, %c0_i32, %arg1 : i32, i32, i32
  }
}

</mosaic_0001>

<bundles_post_ra>
// kernel: tpu_custom_call.1
= control target key start
LH: loop header
LB: loop body
LE: loop exit
PB: predicated region body
PF: predicated region fallthrough
CT: control target
= control target key end

     0   :  { %10 = vsyncpa [#allocation3], 0  ;;  %s2336_s0 = inlined_call_operand.vmem [shape: bf16[2,7,8,128], index: 0, kind: input, shape index: {}]   ;;  %s2337_s1 = inlined_call_operand.vmem [shape: bf16[16,7], index: 1, kind: input, shape index: {}]   ;;  %s2338_s2 = inlined_call_operand.vmem [shape: f32[16,1], index: 2, kind: input, shape index: {}]   ;;  %s2339_s3 = inlined_call_operand.vmem [shape: bf16[32,16], index: 3, kind: input, shape index: {}]   ;;  %s2340_s4 = inlined_call_operand.vmem [shape: f32[32,1], index: 4, kind: input, shape index: {}]   ;;  %s2341_s5 = inlined_call_operand.hbm [shape: f32[2,32,128], index: 5, kind: output, shape index: {}]  }
   0x1   :  { %12 = vsyncpa [#allocation3 + $0x1], 0  ;;  %s1957_s18 = smov 0   ;;  %s1959_s19 = smov 0  }
   0x2   :  { %s1961_s20 = smov 0   ;;  %s1963_s21 = smov 0  }
   0x3   :  { %s1965_s22 = smov 0   ;;  %s1967_s23 = smov 0  }
   0x4 LB: > { %s1541_s24 = sadd.s32 4294967295, %s1918_s23   ;;  %s1542_s25 = sadd.s32 4294967294, %s1918_s23   ;;  %s1918_s23 = sphi %s1967_s23, %s18_s23   ;;  %s1914_s22 = sphi %s1965_s22, %s2348_s22   ;;  %s1910_s21 = sphi %s1963_s21, %s2347_s21   ;;  %s1906_s20 = sphi %s1961_s20, %s2346_s20   ;;  %s1902_s19 = sphi %s1959_s19, %s2345_s19   ;;  %s1898_s18 = sphi %s1957_s18, %s2344_s18  }
   0x5   : > { %s37_s26 = sadd.s32 1, %s1914_s22  ;;  %s160_s27 = sadd.s32 1, %s1906_s20 }
   0x6   : > { %p39_p0 = scmp.ge.s32.totalorder %s37_s26, 2  ;;  %p170_p1 = scmp.ne.s32.totalorder %s1906_s20, %s1902_s19 }
   0x7   : > { %p171_p2 = scmp.eq.s32.totalorder %s1541_s24, 1  ;;  %p176_p3 = scmp.ne.s32.totalorder %s1902_s19, %s1898_s18 }
   0x8   : > { %s2350_s26 = smov (%p39_p0, %s37_s26), 0  ;;  %p177_p5 = scmp.eq.s32.totalorder %s1542_s25, 1 }
   0x9   : > { %p1997_p4 = por %p171_p2, %p170_p1  ;;  %s155_s29 = ssub.s32 %s1914_s22, %s2350_s26 }
   0xa   : > { %p1545_p6 = scmp.ge.s32.totalorder %s1918_s23, 1  ;;  %p158_p7 = scmp.eq.s32.totalorder %s155_s29, 0 }
   0xb   : > { %p2004_p8 = por %p177_p5, %p176_p3  ;;  %p221_p9 = scmp.lt.s32.totalorder %s1918_s23, 3 }
   0xc   : > { %s2010_s6 = scalar_select %p158_p7, %s1906_s20, %s160_s27  }
   0xd   : > { %p222_p10 = pnand %p1545_p6, %p221_p9 }
   0xe   : > { %p255_p11 = scmp.lt.s32.totalorder (!%p222_p10), %s1910_s21, 1  ;;  %v1920_v0 = vmov (!%p222_p10), 0.0   ;;  %vm344_vm0 = vcmask (!%p222_p10), 1042432   ;;  %vm1921_vm1 = vmmov (!%p222_p10), 0   ;;  %v276_v1 = vld [vmem:[%s2338_s2] sm:$0xff] (!%p222_p10)  ;;  %v1922_v2 = vmov (!%p222_p10), 0  }
   0xf   : > { %225 = sbr.rel (%p222_p10) target bundleno = 561 (0x231), region = 40  ;;  %1649 = vmatprep.subr.bf16.mxu0 (!%p222_p10), %v1920_v0  ;;  %1651 = vmatprep.mubr.msk.bf16.mxu0 (!%p222_p10), %vm1921_vm1, %v1920_v0  ;;  %vm322_vm2 = vcmask (!%p222_p10), 1041409   ;;  %vm325_vm3 = vcmask (!%p222_p10), 1042434   ;;  %vm345_vm4 = vcmask (!%p222_p10), 1043456   ;;  %v1923_v3 = vmov (!%p222_p10), 65535   ;;  %v277_v5 = vld [vmem:[%s2338_s2 + $0x8] sm:$0xff] (!%p222_p10) }
  0x10   : > { %1807 = vset.pattern.permute.xlu0 (!%p222_p10), %v1922_v2  ;;  %1808 = vset.pattern.permute.xlu1 (!%p222_p10), %v1922_v2  ;;  %v346_v4 = vsel (!%p222_p10), %vm344_vm0, 4294967295, %v1923_v3  ;;  %vm328_vm5 = vcmask (!%p222_p10), 1043459   ;;  %vm331_vm6 = vcmask (!%p222_p10), 1044484   ;;  %vm334_vm7 = vcmask (!%p222_p10), 1045509   ;;  %v401_v7 = vld [vmem:[%s2340_s4 + $0x10] sm:$0xff] (!%p222_p10)  ;;  %s252_s15 = sand.u32 (!%p222_p10), 1, %s1902_s19  }
  0x11   : > { %280 = vperm.xlu0 (!%p222_p10), %1807, %v276_v1   ;;  %vm337_vm8 = vcmask (!%p222_p10), 1046534   ;;  %v2039_v19 = vsel (!%p222_p10), %vm345_vm4, %v346_v4, 0  ;;  %vm340_vm9 = vcmask (!%p222_p10), 56320   ;;  %vm433_vm10 = vcmask (!%p222_p10), 130048   ;;  %s1546_s16 = sshll.u32 (!%p222_p10), %s252_s15, 5  ;;  %s1608_s25 = sshll.u32 (!%p222_p10), %s1910_s21, 9 }
  0x12   : > { %s254_s17 = scalar_lea.vmem (!%p222_p10), [#allocation2], %s1546_s16  ;;  %s1924_s9 = smov (!%p222_p10), [#allocation2]  }
  0x13   : > { %s1457_s24 = sshll.u32 (!%p222_p10), %s254_s17, 4  ;;  %s2281_s24 = int_to_ptr.vmem [resolvable:$true] %s1457_s24 }
  0x14   : > { %s1840_s8 = scalar_lea.vmem (!%p222_p10), %s2281_s24, 512 }
  0x15   : > { %285 = vperm.xlu0 (!%p222_p10), %1807, %v277_v5   ;;  %v2065_v5 = vld [vmem:[%s2337_s1] sm:$0xff] (!%p222_p10)   ;;  %p1841_p12 = scmp.ne.s32.totalorder (!%p222_p10), %s2281_s24, %s1840_s8 }
  0x16   : > { %s256_s7 = scalar_select %p255_p11, %s1910_s21, 1 }
  0x17   : > { %s2290_s21 = scalar_lea.sflag [#allocation3], %s252_s15  ;;  %p1842_p13 = pnand %p1841_p12, %p1997_p4 }
  0x18   : > { %s1745_s10 = smul.u32 28, %s256_s7  ;;  %s2286_s7 = scalar_lea.hbm %s2341_s5, %s1608_s25 }
  0x19   : > { %415 = vperm.xlu0 %1807, %v401_v7   ;;  %p1843_p0 = pneg %p1842_p13 }
  0x1a   : > { %s2023_s13 = scalar_lea.vmem %s2336_s0, %s1745_s10  ;;  %s1844_s10 = sshll.u32 %s1924_s9, 4  ;;  %s1845_s10 = int_to_ptr.vmem [resolvable:$false] %s1844_s10 }
  0x1b   : > { %v1809_v6 = vld [vmem:[%s2023_s13] ss:$0 sps:$4 sm:$0x11]   ;;  %v1810_v8 = vld [vmem:[%s2023_s13 + $0x4] ss:$0 sps:$4 sm:$0x11]   ;;  %p1847_p1 = scmp.lt.s32.totalorder %s2281_s24, %s1845_s10 }
  0x1c   : > { %v1811_v9 = vld [vmem:[%s2023_s13 + $0x8] ss:$0 sps:$4 sm:$0x11]   ;;  %v1812_v10 = vld [vmem:[%s2023_s13 + $0xc] ss:$0 sps:$4 sm:$0x11]   ;;  %v314_v12 = vunpack.c.l.b16 %v1809_v6  ;;  %v315_v15 = vunpack.c.l.b16 %v1810_v8 }
  0x1d   : > { %v1813_v11 = vld [vmem:[%s2023_s13 + $0x10] ss:$0 sps:$4 sm:$0x11]   ;;  %v1814_v13 = vld [vmem:[%s2023_s13 + $0x14] ss:$0 sps:$4 sm:$0x11]   ;;  %v316_v16 = vunpack.c.l.b16 %v1811_v9  ;;  %v317_v17 = vunpack.c.l.b16 %v1812_v10 }
  0x1e   : > { %v1815_v14 = vld [vmem:[%s2023_s13 + $0x18] ss:$0 sps:$4 sm:$0x11]   ;;  %v318_v18 = vunpack.c.l.b16 %v1813_v11  ;;  %v493_v20 = vrot.slane %v314_v12, 1  ;;  %v319_v21 = vunpack.c.l.b16 %v1814_v13  ;;  %v321_v23 = vrot.slane %v315_v15, 7  ;;  %s1846_s11 = scalar_lea.vmem %s1845_s10, 1024 }
  0x1f   : > { %v320_v22 = vunpack.c.l.b16 %v1815_v14  ;;  %v324_v24 = vrot.slane %v316_v16, 6  ;;  %v327_v25 = vrot.slane %v317_v17, 5  ;;  %v495_v27 = vrot.slane %v316_v16, 7  ;;  %v1817_v39 = vld [vmem:[%s2023_s13] ss:$0 sps:$4 sm:$0x22]   ;;  %p1848_p2 = scmp.lt.s32.totalorder %s1846_s11, %s1840_s8 }
  0x20   : > { %v330_v26 = vrot.slane %v318_v18, 4  ;;  %v497_v28 = vrot.slane %v317_v17, 6  ;;  %v323_v29 = vsel %vm322_vm2, %v321_v23, %v314_v12  ;;  %v333_v30 = vrot.slane %v319_v21, 3  ;;  %v1818_v40 = vld [vmem:[%s2023_s13 + $0x4] ss:$0 sps:$4 sm:$0x22]  }
  0x21   : > { %v336_v31 = vrot.slane %v320_v22, 2  ;;  %v499_v32 = vrot.slane %v318_v18, 5  ;;  %v326_v33 = vsel %vm325_vm3, %v324_v24, %v323_v29  ;;  %v501_v34 = vrot.slane %v319_v21, 4  ;;  %v1819_v43 = vld [vmem:[%s2023_s13 + $0x8] ss:$0 sps:$4 sm:$0x22]   ;;  %p1849_p3 = por %p1848_p2, %p1847_p1 }
  0x22   : > { %v503_v35 = vrot.slane %v320_v22, 3  ;;  %v494_v36 = vsel %vm322_vm2, %v315_v15, %v493_v20  ;;  %v329_v37 = vsel %vm328_vm5, %v327_v25, %v326_v33  ;;  %v1820_v44 = vld [vmem:[%s2023_s13 + $0xc] ss:$0 sps:$4 sm:$0x22]   ;;  %v638_v49 = vunpack.c.l.b16 %v1817_v39 }
  0x23   : > { %v496_v38 = vsel %vm325_vm3, %v495_v27, %v494_v36  ;;  %v332_v41 = vsel %vm331_vm6, %v330_v26, %v329_v37  ;;  %v1821_v47 = vld [vmem:[%s2023_s13 + $0x10] ss:$0 sps:$4 sm:$0x22]   ;;  %v1822_v48 = vld [vmem:[%s2023_s13 + $0x14] ss:$0 sps:$4 sm:$0x22]   ;;  %v639_v50 = vunpack.c.l.b16 %v1818_v40  ;;  %v640_v54 = vunpack.c.l.b16 %v1819_v43  ;;  %p1850_p5 = pnand %p1849_p3, %p1843_p0 }
  0x24   : > { %v498_v42 = vsel %vm328_vm5, %v497_v28, %v496_v38  ;;  %v335_v45 = vsel %vm334_vm7, %v333_v30, %v332_v41  ;;  %v1823_v53 = vld [vmem:[%s2023_s13 + $0x18] ss:$0 sps:$4 sm:$0x22]   ;;  %v641_v55 = vunpack.c.l.b16 %v1820_v44  ;;  %v642_v58 = vunpack.c.l.b16 %v1821_v47  ;;  %v1824_v4 = vld [vmem:[%s2023_s13] ss:$0 sps:$4 sm:$0x44]  }
  0x25   : > { %v500_v46 = vsel %vm331_vm6, %v499_v32, %v498_v42  ;;  %v338_v51 = vsel %vm337_vm8, %v336_v31, %v335_v45  ;;  %v643_v59 = vunpack.c.l.b16 %v1822_v48  ;;  %v644_v61 = vunpack.c.l.b16 %v1823_v53  ;;  %v1825_v10 = vld [vmem:[%s2023_s13 + $0x4] ss:$0 sps:$4 sm:$0x44]   ;;  %v1826_v15 = vld [vmem:[%s2023_s13 + $0x8] ss:$0 sps:$4 sm:$0x44]  }
  0x26   : > { %v502_v52 = vsel %vm334_vm7, %v501_v34, %v500_v46  ;;  %v339_v56 = vpack.c.b16 %v338_v51, %v338_v51  ;;  %v645_v62 = vrot.slane %v638_v49, 2  ;;  %v646_v63 = vrot.slane %v639_v50, 1  ;;  %v1827_v20 = vld [vmem:[%s2023_s13 + $0xc] ss:$0 sps:$4 sm:$0x44]  }
  0x27   : > { %v504_v57 = vsel %vm337_vm8, %v503_v35, %v502_v52  ;;  %v649_v2 = vrot.slane %v641_v55, 7  ;;  %v651_v3 = vrot.slane %v642_v58, 6  ;;  %v653_v8 = vrot.slane %v643_v59, 5  ;;  %v1828_v24 = vld [vmem:[%s2023_s13 + $0x10] ss:$0 sps:$4 sm:$0x44]  }
  0x28   : > { %v505_v60 = vpack.c.b16 %v504_v57, %v504_v57  ;;  %v349_v1 = vand.u32 %v2039_v19, %v339_v56  ;;  %v647_v7 = vsel %vm322_vm2, %v646_v63, %v645_v62  ;;  %v762_v9 = vrot.slane %v638_v49, 3  ;;  %v2079_v25 = vld [vmem:[%s2023_s13 + $0x14] ss:$0 sps:$4 sm:$0x44]  }
  0x29   : > { %v648_v11 = vsel %vm325_vm3, %v640_v54, %v647_v7  ;;  %v655_v12 = vrot.slane %v644_v61, 4  ;;  %v763_v13 = vrot.slane %v639_v50, 2  ;;  %v765_v14 = vrot.slane %v640_v54, 1  ;;  %v2086_v30 = vld [vmem:[%s2023_s13 + $0x18] ss:$0 sps:$4 sm:$0x44]  }
  0x2a   : > { %v507_v6 = vand.u32 %v505_v60, %v2039_v19  ;;  %1650 = vmatpush3.bf16.msra.mxu0 %v349_v1  ;;  %v650_v16 = vsel %vm328_vm5, %v649_v2, %v648_v11  ;;  %v768_v17 = vrot.slane %v642_v58, 7  ;;  %v770_v18 = vrot.slane %v643_v59, 6  ;;  %v1831_v45 = vld [vmem:[%s2023_s13] ss:$0 sps:$4 sm:$0x88]  }
  0x2b   : > { %1661 = vmatprep.subr.bf16.mxu0 %v1920_v0  ;;  %v907_v21 = vunpack.c.l.b16 %v1824_v4  ;;  %v652_v22 = vsel %vm331_vm6, %v651_v3, %v650_v16  ;;  %v764_v23 = vsel %vm322_vm2, %v763_v13, %v762_v9  ;;  %v908_v26 = vunpack.c.l.b16 %v1825_v10  ;;  %v1832_v50 = vld [vmem:[%s2023_s13 + $0x4] ss:$0 sps:$4 sm:$0x88]   ;;  %v1834_v63 = vld [vmem:[%s2023_s13 + $0xc] ss:$0 sps:$4 sm:$0x88]  }
  0x2c   : > { %v909_v27 = vunpack.c.l.b16 %v1826_v15  ;;  %v654_v28 = vsel %vm334_vm7, %v653_v8, %v652_v22  ;;  %v766_v29 = vsel %vm325_vm3, %v765_v14, %v764_v23  ;;  %v910_v31 = vunpack.c.l.b16 %v1827_v20  ;;  %v1835_v9 = vld [vmem:[%s2023_s13 + $0x10] ss:$0 sps:$4 sm:$0x88]   ;;  %v1836_v15 = vld [vmem:[%s2023_s13 + $0x14] ss:$0 sps:$4 sm:$0x88]  }
  0x2d   : > { %1652 = vmatmul.mubr.msk.bf16.vlgmr.msra.gmra.mrb[0].mxu0 %vm340_vm9, %v2065_v5  ;;  %v914_v32 = vrot.slane %v907_v21, 4  ;;  %v656_v33 = vsel %vm337_vm8, %v655_v12, %v654_v28  ;;  %v767_v34 = vsel %vm328_vm5, %v641_v55, %v766_v29  ;;  %v772_v37 = vrot.slane %v644_v61, 5  ;;  %v1833_v55 = vld [vmem:[%s2023_s13 + $0x8] ss:$0 sps:$4 sm:$0x88]  }
  0x2e   : > { %1662 = vmatpush3.bf16.msra.mxu0 %v507_v6  ;;  %1663 = vmatprep.mubr.msk.bf16.mxu0 %vm1921_vm1, %v1920_v0  ;;  %v657_v35 = vpack.c.b16 %v656_v33, %v656_v33  ;;  %v769_v36 = vsel %vm331_vm6, %v768_v17, %v767_v34  ;;  %v915_v38 = vrot.slane %v908_v26, 3  ;;  %v912_v40 = vunpack.c.l.b16 %v2079_v25 }
  0x2f   : > { %1673 = vmatprep.subr.bf16.mxu0 %v1920_v0  ;;  %v771_v39 = vsel %vm334_vm7, %v770_v18, %v769_v36  ;;  %v917_v41 = vrot.slane %v909_v27, 2  ;;  %v919_v42 = vrot.slane %v910_v31, 1  ;;  %v911_v43 = vunpack.c.l.b16 %v1828_v24 }
  0x30   : > { %v916_v44 = vsel %vm322_vm2, %v915_v38, %v914_v32  ;;  %v659_v46 = vand.u32 %v657_v35, %v2039_v19  ;;  %v1031_v48 = vrot.slane %v907_v21, 5  ;;  %v1032_v49 = vrot.slane %v908_v26, 4  ;;  %v1837_v32 = vld [vmem:[%s2023_s13 + $0x18] ss:$0 sps:$4 sm:$0x88]  }
  0x31   : > { %v918_v47 = vsel %vm325_vm3, %v917_v41, %v916_v44  ;;  %v773_v51 = vsel %vm337_vm8, %v772_v37, %v771_v39  ;;  %v913_v52 = vunpack.c.l.b16 %v2086_v30  ;;  %v1034_v54 = vrot.slane %v909_v27, 3 }
  0x32   : > { %v920_v53 = vsel %vm328_vm5, %v919_v42, %v918_v47  ;;  %v922_v56 = vrot.slane %v912_v40, 7  ;;  %v1033_v57 = vsel %vm322_vm2, %v1032_v49, %v1031_v48  ;;  %v1176_v59 = vunpack.c.l.b16 %v1831_v45 }
  0x33   : > { %v921_v58 = vsel %vm331_vm6, %v911_v43, %v920_v53  ;;  %v1177_v60 = vunpack.c.l.b16 %v1832_v50  ;;  %v774_v61 = vpack.c.b16 %v773_v51, %v773_v51  ;;  %v1036_v62 = vrot.slane %v910_v31, 2 }
  0x34   : > { %v924_v1 = vrot.slane %v913_v52, 6  ;;  %v1035_v2 = vsel %vm325_vm3, %v1034_v54, %v1033_v57  ;;  %v1178_v3 = vunpack.c.l.b16 %v1833_v55  ;;  %v923_v4 = vsel %vm334_vm7, %v922_v56, %v921_v58  ;;  %v2169_v55 = vld [vmem:[%s2339_s3] sm:$0xff]  }
  0x35   : > { %1664 = vmatmul.mubr.msk.bf16.vlgmr.msra.gmra.mrb[4].mxu0 %vm340_vm9, %v2065_v5  ;;  %v1183_v6 = vrot.slane %v1176_v59, 6  ;;  %v1184_v7 = vrot.slane %v1177_v60, 5  ;;  %v1038_v8 = vrot.slane %v911_v43, 1  ;;  %v776_v10 = vand.u32 %v774_v61, %v2039_v19  ;;  %1657 = vmatprep.mubr.msk.bf16.mxu1 %vm433_vm10, %v2169_v55 }
  0x36   : > { %1674 = vmatpush3.bf16.msra.mxu0 %v659_v46  ;;  %1675 = vmatprep.mubr.msk.bf16.mxu0 %vm1921_vm1, %v1920_v0  ;;  %v1037_v11 = vsel %vm328_vm5, %v1036_v62, %v1035_v2  ;;  %v1179_v12 = vunpack.c.l.b16 %v1834_v63  ;;  %v925_v13 = vsel %vm337_vm8, %v924_v1, %v923_v4  ;;  %v1186_v14 = vrot.slane %v1178_v3, 4 }
  0x37   : > { %1685 = vmatprep.subr.bf16.mxu0 %v1920_v0  ;;  %v1185_v16 = vsel %vm322_vm2, %v1184_v7, %v1183_v6  ;;  %v1039_v17 = vsel %vm331_vm6, %v1038_v8, %v1037_v11  ;;  %v1180_v18 = vunpack.c.l.b16 %v1835_v9  ;;  %v926_v20 = vpack.c.b16 %v925_v13, %v925_v13  ;;  %v2192_v8 = vld [vmem:[%s2339_s3 + $0x8] sm:$0xff]  }
  0x38   : > { %v1188_v21 = vrot.slane %v1179_v12, 3  ;;  %v1041_v22 = vrot.slane %v913_v52, 7  ;;  %v1187_v23 = vsel %vm325_vm3, %v1186_v14, %v1185_v16  ;;  %v1040_v24 = vsel %vm334_vm7, %v912_v40, %v1039_v17 }
  0x39   : > { %v1181_v25 = vunpack.c.l.b16 %v1836_v15  ;;  %v1300_v26 = vrot.slane %v1176_v59, 7  ;;  %v1301_v27 = vrot.slane %v1177_v60, 6  ;;  %v1190_v28 = vrot.slane %v1180_v18, 2 }
  0x3a   : > { %v928_v29 = vand.u32 %v926_v20, %v2039_v19  ;;  %v1189_v30 = vsel %vm328_vm5, %v1188_v21, %v1187_v23  ;;  %v1042_v31 = vsel %vm337_vm8, %v1041_v22, %v1040_v24  ;;  %v1303_v33 = vrot.slane %v1178_v3, 5 }
  0x3b   : > { %v1192_v34 = vrot.slane %v1181_v25, 1  ;;  %v1302_v35 = vsel %vm322_vm2, %v1301_v27, %v1300_v26  ;;  %v1191_v36 = vsel %vm331_vm6, %v1190_v28, %v1189_v30  ;;  %v1043_v37 = vpack.c.b16 %v1042_v31, %v1042_v31 }
  0x3c   : > { %v1305_v38 = vrot.slane %v1179_v12, 4  ;;  %v1182_v39 = vunpack.c.l.b16 %v1837_v32  ;;  %v1304_v40 = vsel %vm325_vm3, %v1303_v33, %v1302_v35  ;;  %v1307_v42 = vrot.slane %v1180_v18, 3 }
  0x3d   : > { %1676 = vmatmul.mubr.msk.bf16.vlgmr.msra.gmra.mrb[8].mxu0 %vm340_vm9, %v2065_v5  ;;  %v1193_v41 = vsel %vm334_vm7, %v1192_v34, %v1191_v36  ;;  %v1045_v43 = vand.u32 %v1043_v37, %v2039_v19  ;;  %v1309_v46 = vrot.slane %v1181_v25, 2 }
  0x3e   : > { %1686 = vmatpush3.bf16.msra.mxu0 %v776_v10  ;;  %1687 = vmatprep.mubr.msk.bf16.mxu0 %vm1921_vm1, %v1920_v0  ;;  %v1306_v44 = vsel %vm328_vm5, %v1305_v38, %v1304_v40  ;;  %v1194_v45 = vsel %vm337_vm8, %v1182_v39, %v1193_v41  ;;  %v1311_v49 = vrot.slane %v1182_v39, 1 }
  0x3f   : > { %1697 = vmatprep.subr.bf16.mxu0 %v1920_v0  ;;  %v1308_v47 = vsel %vm331_vm6, %v1307_v42, %v1306_v44  ;;  %v1195_v48 = vpack.c.b16 %v1194_v45, %v1194_v45 }
  0x40   : > { %v1310_v50 = vsel %vm334_vm7, %v1309_v46, %v1308_v47 }
  0x41   : > { %v1197_v51 = vand.u32 %v1195_v48, %v2039_v19  ;;  %v1312_v52 = vsel %vm337_vm8, %v1311_v49, %v1310_v50 }
  0x42   : > { %v1313_v53 = vpack.c.b16 %v1312_v52, %v1312_v52 }
  0x44   : > { %v1315_v54 = vand.u32 %v1313_v53, %v2039_v19  ;;  %v399_v19 = vld [vmem:[%s2340_s4] sm:$0xff] }
  0x45   : > { %1688 = vmatmul.mubr.msk.bf16.vlgmr.msra.gmra.mrb[12].mxu0 %vm340_vm9, %v2065_v5  ;;  %405 = vperm.xlu1 %1808, %v399_v19  }
  0x46   : > { %1698 = vmatpush3.bf16.msra.mxu0 %v928_v29  ;;  %1699 = vmatprep.mubr.msk.bf16.mxu0 %vm1921_vm1, %v1920_v0 }
  0x47   : > { %1709 = vmatprep.subr.bf16.mxu0 %v1920_v0 }
  0x4d   : > { %1700 = vmatmul.mubr.msk.bf16.vlgmr.msra.gmra.mrb[16].mxu0 %vm340_vm9, %v2065_v5 }
  0x4e   : > { %1710 = vmatpush3.bf16.msra.mxu0 %v1045_v43  ;;  %1711 = vmatprep.mubr.msk.bf16.mxu0 %vm1921_vm1, %v1920_v0 }
  0x4f   : > { %1721 = vmatprep.subr.bf16.mxu0 %v1920_v0 }
  0x55   : > { %1712 = vmatmul.mubr.msk.bf16.vlgmr.msra.gmra.mrb[20].mxu0 %vm340_vm9, %v2065_v5 }
  0x56   : > { %1722 = vmatpush3.bf16.msra.mxu0 %v1197_v51  ;;  %1723 = vmatprep.mubr.msk.bf16.mxu0 %vm1921_vm1, %v1920_v0 }
  0x57   : > { %1733 = vmatprep.subr.bf16.mxu0 %v1920_v0 }
  0x5d   : > { %1724 = vmatmul.mubr.msk.bf16.vlgmr.msra.gmra.mrb[24].mxu0 %vm340_vm9, %v2065_v5 }
  0x5e   : > { %1734 = vmatpush3.bf16.msra.mxu0 %v1315_v54  ;;  %1735 = vmatprep.mubr.msk.bf16.mxu0 %vm1921_vm1, %v1920_v0  ;;  %v400_v0 = vld [vmem:[%s2340_s4 + $0x8] sm:$0xff] }
  0x5f   : > { %410 = vperm.xlu1 %1808, %v400_v0  }
  0x65   : > { %1736 = vmatmul.mubr.msk.bf16.vlgmr.msra.gmra.mrb[28].mxu0 %vm340_vm9, %v2065_v5  ;;  %v402_v5 = vld [vmem:[%s2340_s4 + $0x18] sm:$0xff] }
  0x66   : > { %420 = vperm.xlu1 %1808, %v402_v5  }
  0x90   : > { %v2182_v56 = vpop.permute.xlu0 %280 }
  0x94   : > { %v2185_v60 = vpop.permute.xlu0 %285 }
 0x100   : > { %v385_v57 = vpop.f32.mrb[0].mxu0 }
 0x101   : > { %v386_v58 = vadd.f32 %v385_v57, %v2182_v56  ;;  %v1653_v59 = vpop.f32.mrb[1].mxu0 }
 0x102   : > { %v388_v61 = vpop.f32.mrb[2].mxu0 }
 0x103   : > { %v389_v62 = vadd.f32 %v388_v61, %v2185_v60  ;;  %v1654_v63 = vpop.f32.mrb[3].mxu0  ;;  %v392_v1 = vmax.f32 %v386_v58, 0.0 }
 0x105   : > { %v393_v2 = vmax.f32 %v389_v62, 0.0 }
 0x107   : > { %v394_v3 = vpack.c.bf16 %v393_v2, %v392_v1 }
 0x108   : > { %v543_v4 = vpop.f32.mrb[4].mxu0 }
 0x109   : > { %v544_v6 = vadd.f32 %v543_v4, %v2182_v56  ;;  %1655 = vmatprep.subr.bf16.mxu1 %v394_v3  ;;  %v1665_v7 = vpop.f32.mrb[5].mxu0 }
 0x10a   : > { %1656 = vmatpush3.bf16.msra.mxu1 %v394_v3  ;;  %v546_v9 = vpop.f32.mrb[6].mxu0 }
 0x10b   : > { %v547_v10 = vadd.f32 %v546_v9, %v2185_v60  ;;  %v1666_v11 = vpop.f32.mrb[7].mxu0  ;;  %v550_v12 = vmax.f32 %v544_v6, 0.0 }
 0x10d   : > { %v551_v13 = vmax.f32 %v547_v10, 0.0  ;;  %1658 = vmatmul.mubr.msk.bf16.vlgmr.msra.gmra.mrb[0].mxu1 %vm433_vm10, %v2192_v8 }
 0x10e   : > { %1669 = vmatprep.mubr.msk.bf16.mxu1 %vm433_vm10, %v2169_v55 }
 0x10f   : > { %v552_v14 = vpack.c.bf16 %v551_v13, %v550_v12  ;;  %v2241_v13 = vpop.permute.xlu0 %415 }
 0x110   : > { %v695_v15 = vpop.f32.mrb[8].mxu0 }
 0x111   : > { %v696_v16 = vadd.f32 %v695_v15, %v2182_v56  ;;  %1667 = vmatprep.subr.bf16.mxu1 %v552_v14  ;;  %v1677_v17 = vpop.f32.mrb[9].mxu0 }
 0x112   : > { %1668 = vmatpush3.bf16.msra.mxu1 %v552_v14  ;;  %v698_v18 = vpop.f32.mrb[10].mxu0 }
 0x113   : > { %v699_v20 = vadd.f32 %v698_v18, %v2185_v60  ;;  %v1678_v21 = vpop.f32.mrb[11].mxu0  ;;  %v702_v22 = vmax.f32 %v696_v16, 0.0 }
 0x115   : > { %v703_v23 = vmax.f32 %v699_v20, 0.0  ;;  %1670 = vmatmul.mubr.msk.bf16.vlgmr.msra.gmra.mrb[4].mxu1 %vm433_vm10, %v2192_v8 }
 0x116   : > { %1681 = vmatprep.mubr.msk.bf16.mxu1 %vm433_vm10, %v2169_v55 }
 0x117   : > { %v704_v24 = vpack.c.bf16 %v703_v23, %v702_v22 }
 0x118   : > { %v812_v25 = vpop.f32.mrb[12].mxu0 }
 0x119   : > { %v813_v26 = vadd.f32 %v812_v25, %v2182_v56  ;;  %1679 = vmatprep.subr.bf16.mxu1 %v704_v24  ;;  %v1689_v27 = vpop.f32.mrb[13].mxu0 }
 0x11a   : > { %1680 = vmatpush3.bf16.msra.mxu1 %v704_v24  ;;  %v815_v28 = vpop.f32.mrb[14].mxu0 }
 0x11b   : > { %v816_v29 = vadd.f32 %v815_v28, %v2185_v60  ;;  %v1690_v30 = vpop.f32.mrb[15].mxu0  ;;  %v819_v31 = vmax.f32 %v813_v26, 0.0 }
 0x11d   : > { %v820_v32 = vmax.f32 %v816_v29, 0.0  ;;  %1682 = vmatmul.mubr.msk.bf16.vlgmr.msra.gmra.mrb[8].mxu1 %vm433_vm10, %v2192_v8 }
 0x11e   : > { %1693 = vmatprep.mubr.msk.bf16.mxu1 %vm433_vm10, %v2169_v55 }
 0x11f   : > { %v821_v33 = vpack.c.bf16 %v820_v32, %v819_v31 }
 0x120   : > { %v964_v34 = vpop.f32.mrb[16].mxu0 }
 0x121   : > { %v965_v35 = vadd.f32 %v964_v34, %v2182_v56  ;;  %1691 = vmatprep.subr.bf16.mxu1 %v821_v33  ;;  %v1701_v36 = vpop.f32.mrb[17].mxu0 }
 0x122   : > { %1692 = vmatpush3.bf16.msra.mxu1 %v821_v33  ;;  %v967_v37 = vpop.f32.mrb[18].mxu0 }
 0x123   : > { %v968_v38 = vadd.f32 %v967_v37, %v2185_v60  ;;  %v1702_v39 = vpop.f32.mrb[19].mxu0  ;;  %v971_v40 = vmax.f32 %v965_v35, 0.0 }
 0x125   : > { %v972_v41 = vmax.f32 %v968_v38, 0.0  ;;  %1694 = vmatmul.mubr.msk.bf16.vlgmr.msra.gmra.mrb[12].mxu1 %vm433_vm10, %v2192_v8 }
 0x126   : > { %1705 = vmatprep.mubr.msk.bf16.mxu1 %vm433_vm10, %v2169_v55 }
 0x127   : > { %v973_v42 = vpack.c.bf16 %v972_v41, %v971_v40 }
 0x128   : > { %v1081_v43 = vpop.f32.mrb[20].mxu0 }
 0x129   : > { %v1082_v44 = vadd.f32 %v1081_v43, %v2182_v56  ;;  %1703 = vmatprep.subr.bf16.mxu1 %v973_v42  ;;  %v1713_v45 = vpop.f32.mrb[21].mxu0 }
 0x12a   : > { %1704 = vmatpush3.bf16.msra.mxu1 %v973_v42  ;;  %v1084_v46 = vpop.f32.mrb[22].mxu0 }
 0x12b   : > { %v1085_v47 = vadd.f32 %v1084_v46, %v2185_v60  ;;  %v1714_v48 = vpop.f32.mrb[23].mxu0  ;;  %v1088_v49 = vmax.f32 %v1082_v44, 0.0 }
 0x12d   : > { %v1089_v50 = vmax.f32 %v1085_v47, 0.0  ;;  %1706 = vmatmul.mubr.msk.bf16.vlgmr.msra.gmra.mrb[16].mxu1 %vm433_vm10, %v2192_v8 }
 0x12e   : > { %1717 = vmatprep.mubr.msk.bf16.mxu1 %vm433_vm10, %v2169_v55 }
 0x12f   : > { %v1090_v51 = vpack.c.bf16 %v1089_v50, %v1088_v49 }
 0x130   : > { %v1233_v52 = vpop.f32.mrb[24].mxu0 }
 0x131   : > { %v1234_v53 = vadd.f32 %v1233_v52, %v2182_v56  ;;  %1715 = vmatprep.subr.bf16.mxu1 %v1090_v51  ;;  %v1725_v54 = vpop.f32.mrb[25].mxu0 }
 0x132   : > { %1716 = vmatpush3.bf16.msra.mxu1 %v1090_v51  ;;  %v1236_v19 = vpop.f32.mrb[26].mxu0 }
 0x133   : > { %v1237_v0 = vadd.f32 %v1236_v19, %v2185_v60  ;;  %v1726_v5 = vpop.f32.mrb[27].mxu0  ;;  %v1240_v57 = vmax.f32 %v1234_v53, 0.0 }
 0x135   : > { %v1241_v58 = vmax.f32 %v1237_v0, 0.0  ;;  %1718 = vmatmul.mubr.msk.bf16.vlgmr.msra.gmra.mrb[20].mxu1 %vm433_vm10, %v2192_v8 }
 0x136   : > { %1729 = vmatprep.mubr.msk.bf16.mxu1 %vm433_vm10, %v2169_v55 }
 0x137   : > { %v1242_v59 = vpack.c.bf16 %v1241_v58, %v1240_v57 }
 0x138   : > { %v1351_v61 = vpop.f32.mrb[28].mxu0 }
 0x139   : > { %v1352_v62 = vadd.f32 %v1351_v61, %v2182_v56  ;;  %1727 = vmatprep.subr.bf16.mxu1 %v1242_v59  ;;  %v1737_v63 = vpop.f32.mrb[29].mxu0  ;;  %v2237_v56 = vpop.permute.xlu1 %405 }
 0x13a   : > { %1728 = vmatpush3.bf16.msra.mxu1 %v1242_v59  ;;  %v1354_v1 = vpop.f32.mrb[30].mxu0 }
 0x13b   : > { %v1355_v2 = vadd.f32 %v1354_v1, %v2185_v60  ;;  %v1738_v3 = vpop.f32.mrb[31].mxu0  ;;  %v1358_v4 = vmax.f32 %v1352_v62, 0.0 }
 0x13d   : > { %v1359_v6 = vmax.f32 %v1355_v2, 0.0  ;;  %1730 = vmatmul.mubr.msk.bf16.vlgmr.msra.gmra.mrb[24].mxu1 %vm433_vm10, %v2192_v8  ;;  %v2239_v10 = vpop.permute.xlu1 %410 }
 0x13e   : > { %1741 = vmatprep.mubr.msk.bf16.mxu1 %vm433_vm10, %v2169_v55 }
 0x13f   : > { %v1360_v7 = vpack.c.bf16 %v1359_v6, %v1358_v4 }
 0x141   : > { %1739 = vmatprep.subr.bf16.mxu1 %v1360_v7  ;;  %v2243_v14 = vpop.permute.xlu1 %420 }
 0x142   : > { %1740 = vmatpush3.bf16.msra.mxu1 %v1360_v7 }
 0x145   : > { %1742 = vmatmul.mubr.msk.bf16.vlgmr.msra.gmra.mrb[28].mxu1 %vm433_vm10, %v2192_v8 }
 0x1e0   : > { %v1659_v9 = vpop.f32.mrb[0].mxu1 }
 0x1e1   : > { %v474_v60 = vpop.f32.mrb[1].mxu1  ;;  %v483_v55 = vadd.f32 %v1659_v9, %v2241_v13 }
 0x1e2   : > { %v1660_v11 = vpop.f32.mrb[2].mxu1  ;;  %v475_v15 = vadd.f32 %v474_v60, %v2237_v56 }
 0x1e3   : > { %v477_v12 = vpop.f32.mrb[3].mxu1  ;;  %v486_v18 = vadd.f32 %v1660_v11, %v2243_v14  ;;  %v491_v23 = vmax.f32 %v483_v55, 0.0 }
 0x1e4   : > { %v478_v20 = vadd.f32 %v477_v12, %v2239_v10  ;;  %v489_v27 = vmax.f32 %v475_v15, 0.0 }
 0x1e5   : > { %v492_v31 = vmax.f32 %v486_v18, 0.0 }
 0x1e6   : > { %v490_v33 = vmax.f32 %v478_v20, 0.0 }
 0x1e8   : > { %v1671_v16 = vpop.f32.mrb[4].mxu1 }
 0x1e9   : > { %v596_v17 = vadd.f32 %v1671_v16, %v2241_v13  ;;  %v587_v8 = vpop.f32.mrb[5].mxu1 }
 0x1ea   : > { %v588_v21 = vadd.f32 %v587_v8, %v2237_v56  ;;  %v1672_v22 = vpop.f32.mrb[6].mxu1 }
 0x1eb   : > { %v604_v24 = vmax.f32 %v596_v17, 0.0  ;;  %v599_v25 = vadd.f32 %v1672_v22, %v2243_v14  ;;  %v590_v26 = vpop.f32.mrb[7].mxu1 }
 0x1ec   : > { %v602_v28 = vmax.f32 %v588_v21, 0.0  ;;  %v591_v29 = vadd.f32 %v590_v26, %v2239_v10 }
 0x1ed   : > { %v608_v30 = vmax.f32 %v491_v23, %v604_v24  ;;  %v605_v32 = vmax.f32 %v599_v25, 0.0 }
 0x1ee   : > { %v606_v34 = vmax.f32 %v489_v27, %v602_v28  ;;  %v603_v35 = vmax.f32 %v591_v29, 0.0 }
 0x1ef   : > { %v609_v36 = vmax.f32 %v492_v31, %v605_v32 }
 0x1f0   : > { %v607_v37 = vmax.f32 %v490_v33, %v603_v35  ;;  %v1683_v38 = vpop.f32.mrb[8].mxu1 }
 0x1f1   : > { %v748_v39 = vadd.f32 %v1683_v38, %v2241_v13  ;;  %v739_v40 = vpop.f32.mrb[9].mxu1 }
 0x1f2   : > { %v740_v41 = vadd.f32 %v739_v40, %v2237_v56  ;;  %v1684_v42 = vpop.f32.mrb[10].mxu1 }
 0x1f3   : > { %v756_v43 = vmax.f32 %v748_v39, 0.0  ;;  %v751_v44 = vadd.f32 %v1684_v42, %v2243_v14  ;;  %v742_v45 = vpop.f32.mrb[11].mxu1 }
 0x1f4   : > { %v754_v46 = vmax.f32 %v740_v41, 0.0  ;;  %v743_v47 = vadd.f32 %v742_v45, %v2239_v10 }
 0x1f5   : > { %v760_v48 = vmax.f32 %v608_v30, %v756_v43  ;;  %v757_v49 = vmax.f32 %v751_v44, 0.0 }
 0x1f6   : > { %v758_v50 = vmax.f32 %v606_v34, %v754_v46  ;;  %v755_v51 = vmax.f32 %v743_v47, 0.0 }
 0x1f7   : > { %v761_v52 = vmax.f32 %v609_v36, %v757_v49 }
 0x1f8   : > { %v759_v53 = vmax.f32 %v607_v37, %v755_v51  ;;  %v1695_v54 = vpop.f32.mrb[12].mxu1 }
 0x1f9   : > { %v865_v19 = vadd.f32 %v1695_v54, %v2241_v13  ;;  %v856_v0 = vpop.f32.mrb[13].mxu1 }
 0x1fa   : > { %v857_v5 = vadd.f32 %v856_v0, %v2237_v56  ;;  %v1696_v57 = vpop.f32.mrb[14].mxu1 }
 0x1fb   : > { %v873_v58 = vmax.f32 %v865_v19, 0.0  ;;  %v868_v59 = vadd.f32 %v1696_v57, %v2243_v14  ;;  %v859_v61 = vpop.f32.mrb[15].mxu1 }
 0x1fc   : > { %v871_v62 = vmax.f32 %v857_v5, 0.0  ;;  %v860_v63 = vadd.f32 %v859_v61, %v2239_v10 }
 0x1fd   : > { %v877_v1 = vmax.f32 %v760_v48, %v873_v58  ;;  %v874_v2 = vmax.f32 %v868_v59, 0.0 }
 0x1fe   : > { %v875_v3 = vmax.f32 %v758_v50, %v871_v62  ;;  %v872_v4 = vmax.f32 %v860_v63, 0.0 }
 0x1ff   : > { %v878_v6 = vmax.f32 %v761_v52, %v874_v2 }
 0x200   : > { %v876_v7 = vmax.f32 %v759_v53, %v872_v4  ;;  %v1707_v9 = vpop.f32.mrb[16].mxu1 }
 0x201   : > { %v1017_v60 = vadd.f32 %v1707_v9, %v2241_v13  ;;  %v1008_v11 = vpop.f32.mrb[17].mxu1 }
 0x202   : > { %v1009_v12 = vadd.f32 %v1008_v11, %v2237_v56  ;;  %v1708_v55 = vpop.f32.mrb[18].mxu1 }
 0x203   : > { %v1025_v15 = vmax.f32 %v1017_v60, 0.0  ;;  %v1020_v16 = vadd.f32 %v1708_v55, %v2243_v14  ;;  %v1011_v17 = vpop.f32.mrb[19].mxu1 }
 0x204   : > { %v1023_v8 = vmax.f32 %v1009_v12, 0.0  ;;  %v1012_v18 = vadd.f32 %v1011_v17, %v2239_v10 }
 0x205   : > { %v1029_v20 = vmax.f32 %v877_v1, %v1025_v15  ;;  %v1026_v21 = vmax.f32 %v1020_v16, 0.0 }
 0x206   : > { %v1027_v22 = vmax.f32 %v875_v3, %v1023_v8  ;;  %v1024_v23 = vmax.f32 %v1012_v18, 0.0 }
 0x207   : > { %v1030_v24 = vmax.f32 %v878_v6, %v1026_v21 }
 0x208   : > { %v1028_v25 = vmax.f32 %v876_v7, %v1024_v23  ;;  %v1719_v26 = vpop.f32.mrb[20].mxu1 }
 0x209   : > { %v1134_v27 = vadd.f32 %v1719_v26, %v2241_v13  ;;  %v1125_v28 = vpop.f32.mrb[21].mxu1 }
 0x20a   : > { %v1126_v29 = vadd.f32 %v1125_v28, %v2237_v56  ;;  %v1720_v30 = vpop.f32.mrb[22].mxu1 }
 0x20b   : > { %v1142_v31 = vmax.f32 %v1134_v27, 0.0  ;;  %v1137_v32 = vadd.f32 %v1720_v30, %v2243_v14  ;;  %v1128_v33 = vpop.f32.mrb[23].mxu1 }
 0x20c   : > { %v1140_v34 = vmax.f32 %v1126_v29, 0.0  ;;  %v1129_v35 = vadd.f32 %v1128_v33, %v2239_v10 }
 0x20d   : > { %v1146_v36 = vmax.f32 %v1029_v20, %v1142_v31  ;;  %v1143_v37 = vmax.f32 %v1137_v32, 0.0 }
 0x20e   : > { %v1144_v38 = vmax.f32 %v1027_v22, %v1140_v34  ;;  %v1141_v39 = vmax.f32 %v1129_v35, 0.0 }
 0x20f   : > { %v1147_v40 = vmax.f32 %v1030_v24, %v1143_v37 }
 0x210   : > { %v1145_v41 = vmax.f32 %v1028_v25, %v1141_v39  ;;  %v1731_v42 = vpop.f32.mrb[24].mxu1 }
 0x211   : > { %v1286_v43 = vadd.f32 %v1731_v42, %v2241_v13  ;;  %v1277_v44 = vpop.f32.mrb[25].mxu1 }
 0x212   : > { %v1278_v45 = vadd.f32 %v1277_v44, %v2237_v56  ;;  %v1732_v46 = vpop.f32.mrb[26].mxu1 }
 0x213   : > { %v1294_v47 = vmax.f32 %v1286_v43, 0.0  ;;  %v1289_v48 = vadd.f32 %v1732_v46, %v2243_v14  ;;  %v1280_v49 = vpop.f32.mrb[27].mxu1 }
 0x214   : > { %v1292_v50 = vmax.f32 %v1278_v45, 0.0  ;;  %v1281_v51 = vadd.f32 %v1280_v49, %v2239_v10 }
 0x215   : > { %v1298_v52 = vmax.f32 %v1146_v36, %v1294_v47  ;;  %v1295_v53 = vmax.f32 %v1289_v48, 0.0 }
 0x216   : > { %v1296_v54 = vmax.f32 %v1144_v38, %v1292_v50  ;;  %v1293_v19 = vmax.f32 %v1281_v51, 0.0 }
 0x217   : > { %v1299_v0 = vmax.f32 %v1147_v40, %v1295_v53 }
 0x218   : > { %v1297_v5 = vmax.f32 %v1145_v41, %v1293_v19  ;;  %v1743_v57 = vpop.f32.mrb[28].mxu1 }
 0x219   : > { %v1404_v58 = vadd.f32 %v1743_v57, %v2241_v13  ;;  %v1395_v59 = vpop.f32.mrb[29].mxu1 }
 0x21a   : > { %v1396_v61 = vadd.f32 %v1395_v59, %v2237_v56  ;;  %v1744_v62 = vpop.f32.mrb[30].mxu1 }
 0x21b   : > { %v1412_v63 = vmax.f32 %v1404_v58, 0.0  ;;  %v1407_v1 = vadd.f32 %v1744_v62, %v2243_v14  ;;  %v1398_v2 = vpop.f32.mrb[31].mxu1 }
 0x21c   : > { %v1410_v3 = vmax.f32 %v1396_v61, 0.0  ;;  %v1399_v4 = vadd.f32 %v1398_v2, %v2239_v10 }
 0x21d   : > { %v1416_v6 = vmax.f32 %v1298_v52, %v1412_v63  ;;  %v1413_v7 = vmax.f32 %v1407_v1, 0.0 }
 0x21e   : > { %v1414_v9 = vmax.f32 %v1296_v54, %v1410_v3  ;;  %v1411_v13 = vmax.f32 %v1399_v4, 0.0 }
 0x21f   : > { %1424 = vst [vmem:[%s254_s17 + $0x10] sm:$0xff] %v1416_v6  ;;  %v1417_v56 = vmax.f32 %v1299_v0, %v1413_v7 }
 0x220   : > { %1422 = vst [vmem:[%s254_s17] sm:$0xff] %v1414_v9  ;;  %v1415_v10 = vmax.f32 %v1297_v5, %v1411_v13 }
 0x221   : > { %1425 = vst [vmem:[%s254_s17 + $0x18] sm:$0xff] %v1417_v56 }
 0x222   : > { %1423 = vst [vmem:[%s254_s17 + $0x8] sm:$0xff] %v1415_v10 }
 0x223   : > { %1853 = shalt.err (!%p1850_p5)
}
 0x224   : > { %s1854_s12 = scalar_lea.hbm %s2286_s7, 512  ;;  %s1858_s15 = scalar_lea.hbm %s2341_s5, 1024 }
 0x225   : > { %p1855_p6 = scmp.ne.s32.totalorder %s2286_s7, %s1854_s12  ;;  %p1859_p10 = scmp.lt.u32.totalorder %s2286_s7, %s2341_s5 }
 0x226   : > { %p1860_p11 = scmp.lt.u32.totalorder %s1858_s15, %s1854_s12  ;;  %p1862_p13 = scmp.lt.u32.totalorder %s1854_s12, %s2286_s7 }
 0x227   : > { %p1856_p7 = pnand %p1855_p6, %p1997_p4 }
 0x228   : > { %p1861_p12 = por %p1860_p11, %p1859_p10 }
 0x229   : > { %p1857_p9 = pneg %p1856_p7 }
 0x22a   : > { %p1863_p0 = por %p1862_p13, %p1861_p12 }
 0x22c   : > { %p1864_p1 = pnand %p1863_p0, %p1857_p9 }
 0x22e   : > { %1867 = shalt.err (!%p1864_p1)
}
 0x22f   : > { %s1925_s25 = smov 128   ;;  %s1926_s27 = smov 8  }
 0x230   : > { %1746 = dma.vmem_to_hbm [thread:$0]  (%p1997_p4), %s2281_s24, 512, %s2286_s7, %s2290_s21, %s1925_s25, %s1925_s25, %s1926_s27  }
 0x231 PF: > { %p1752_p2 = scmp.ge.s32.totalorder %s1918_s23, 2  ;;  %s1472_s29 = sand.u32 1, %s1898_s18  }
 0x232   : > { %s1473_s8 = scalar_lea.sflag [#allocation3], %s1472_s29 }
 0x233   : > { %p1749_p3 = pnand %p1752_p2, %p2004_p8 }
 0x235   : > { %1893 = dma.done.wait (!%p1749_p3), %s1473_s8, 512  }
 0x236   : > { %1895 = vsyncadd (!%p1749_p3), %s1473_s8, 4294966784  ;;  %s18_s23 = sadd.s32 1, %s1918_s23   ;;  %s2344_s18 = smov %s1902_s19 }
 0x237   : > { %p15_p5 = scmp.ge.s32.totalorder %s18_s23, 4   ;;  %s2345_s19 = smov %s1906_s20 }
 0x238   : > { %s2346_s20 = smov %s2010_s6  ;;  %s2347_s21 = smov %s1914_s22 }
 0x239   : > { %s2348_s22 = smov %s2350_s26  ;;  %17 = sbr.rel (!%p15_p5) target bundleno = 4 (0x4), region = 83 }
 0x240   :  { %1478 = vsyncpa [#allocation3], 1 }
 0x241   :  { %1480 = vsyncpa [#allocation3 + $0x1], 1 }

</bundles_post_ra>
